<compile_context>
chip_gen: v7x
topology: tpu7x:2x2x1
jax: 0.10.0
libtpu: 0.0.40
codegen_flags: <defaults>
</compile_context>

<pallas_src>
import math

import jax
import jax.numpy as jnp
from jax import lax
from jax.experimental import pallas as pl
from jax.experimental.pallas import tpu as pltpu


def _round_up(n: int, m: int) -> int:
    return ((n + m - 1) // m) * m


def _cdiv(a: int, b: int) -> int:
    return -(-a // b)


def _make_kernel(*, ln_value: float, power_min: float, tau: float,
                 dim: int, batch: int, tile: int, has_cdelta: bool):
    tau = float(tau)

    def kernel(*refs):
        if has_cdelta:
            x1_ref, x2_ref, t_ref, cd_ref, o_ref, acc_ref = refs
        else:
            x1_ref, x2_ref, t_ref, o_ref, acc_ref = refs
            cd_ref = None

        core = pl.program_id(0)            # "parallel": split across TensorCores
        i = pl.program_id(1)               # "arbitrary": reduction over row tiles
        n_i = pl.num_programs(1)

        @pl.when(i == 0)
        def _init():
            acc_ref[...] = jnp.zeros_like(acc_ref)

        # weights = value ** (power_min + d), rebuilt in-kernel (no operand).
        # Rows 0..7 are identical so the NT matmul below has a healthy M=8.
        d_idx = lax.broadcasted_iota(jnp.int32, (8, dim), 1).astype(jnp.float32)
        w8 = jnp.exp(ln_value * (d_idx + power_min))          # (8, D)

        x1 = x1_ref[...].astype(jnp.float32)                  # (tile, D)
        x2 = x2_ref[...].astype(jnp.float32)

        # Lane-dense GEMV on the MXU: contract D of both operands (NT form, same
        # pattern as q @ k.T in attention kernels) -> batch rows land on lanes.
        nt = (((1,), (1,)), ((), ()))
        z1 = lax.dot_general(w8, x1, nt,
                             preferred_element_type=jnp.float32)[0:1, :]   # (1, tile)
        z2 = lax.dot_general(w8, x2, nt,
                             preferred_element_type=jnp.float32)[0:1, :]

        # Validity mask: ragged last tile and the phantom tile of the second
        # core sweep contribute exactly zero.
        g = core * n_i + i                                     # global row-tile index
        col = g * tile + lax.broadcasted_iota(jnp.int32, (1, tile), 1)
        valid = col < batch
        z1 = jnp.where(valid, z1, 1.0)                         # keep divides safe
        z2 = jnp.where(valid, z2, 1.0)

        # q = (z2*exp(-c2)) / (z1*exp(-c1)) = (z2/z1) * exp(c1 - c2)
        q = z2 / z1
        if has_cdelta:
            q = q * jnp.exp(cd_ref[...].astype(jnp.float32))
        t = t_ref[...].astype(jnp.float32)
        r = jnp.exp(t * ln_value)                              # value ** target

        def huber(d):
            a = jnp.abs(d)
            # tau^2/2 + tau*(a - tau) == tau*a - tau^2/2
            return jnp.where(a <= tau, 0.5 * a * a, tau * a - 0.5 * tau * tau)

        h = huber(q - r) + huber(1.0 / q - 1.0 / r)
        h = jnp.where(valid, h, 0.0)
        acc_ref[...] += jnp.sum(h, axis=1, keepdims=True)      # (1,1) scalar acc

        @pl.when(i == n_i - 1)
        def _finalize():
            # (mean(h12) + mean(h21)) / 2 == sum(h12 + h21) / (2*B); per-core
            # partial written into this core's output block, summed in wrapper.
            o_ref[...] = jnp.broadcast_to(acc_ref[...] * (0.5 / batch), (8, 128))

    return kernel


def power_series_loss(x1, x2, target, nlog_c1=None, nlog_c2=None, *,
                      value: float, power_min: int, power_max: int,
                      tau: float = 1.0, tile_rows: int = 2048):
    """Fused Pallas version of PowerSeries.forward; returns a scalar f32 loss."""
    if float(value) <= 0.0:
        # TODO(synk): torch.pow supports value <= 0 with integer exponents; the
        # kernel uses exp(target*log(value)) so it requires value > 0.
        raise ValueError("power_series_loss requires value > 0")

    B, D = x1.shape
    assert x2.shape == (B, D)
    assert D == int(power_max) - int(power_min), \
        "x last dim must equal len(arange(power_min, power_max))"
    ln_value = math.log(float(value))

    # Row-tile choice: no padding of x1/x2, no padding of B to the tile.
    if B <= tile_rows:
        tile = _round_up(B, 8)             # single ragged tile, mask covers the rest
    else:
        tile = _round_up(tile_rows, 128)   # lane-dim blocks of the scalars need 128 align
    nt_total = _cdiv(B, tile)
    nt_per_core = _cdiv(nt_total, 2)
    grid = (2, nt_per_core)                # (core split, row-tile reduction)

    def row_block(c, i):
        # Clamp: the phantom tile of the second core (odd nt_total / small B)
        # re-reads the last real tile; its rows are masked out in the kernel.
        return jnp.minimum(c * nt_per_core + i, nt_total - 1)

    # Per-row scalars, lane-major (1, B). Padding (only when B < tile) touches
    # just these tiny vectors, never x1/x2.
    pad_cols = tile - B if B < tile else 0

    def lane_row(v):
        v = jnp.asarray(v, jnp.float32).reshape(1, B)
        if pad_cols:
            v = jnp.pad(v, ((0, 0), (0, pad_cols)))
        return v

    t_row = lane_row(target)

    has_cd = (nlog_c1 is not None) or (nlog_c2 is not None)
    operands = [x1, x2, t_row]
    x_spec = pl.BlockSpec((tile, D), lambda c, i: (row_block(c, i), 0))
    s_spec = pl.BlockSpec((1, tile), lambda c, i: (0, row_block(c, i)))
    in_specs = [x_spec, x_spec, s_spec]
    if has_cd:
        cd = jnp.zeros((B,), jnp.float32)
        if nlog_c1 is not None:
            cd = cd + jnp.asarray(nlog_c1, jnp.float32).reshape(B)
        if nlog_c2 is not None:
            cd = cd - jnp.asarray(nlog_c2, jnp.float32).reshape(B)
        operands.append(lane_row(cd))
        in_specs.append(s_spec)

    kernel = _make_kernel(ln_value=ln_value, power_min=float(power_min),
                          tau=float(tau), dim=D, batch=B, tile=tile,
                          has_cdelta=has_cd)

    out = pl.pallas_call(
        kernel,
        out_shape=jax.ShapeDtypeStruct((16, 128), jnp.float32),  # 2 per-core partials
        grid=grid,
        in_specs=in_specs,
        out_specs=pl.BlockSpec((8, 128), lambda c, i: (c, 0)),
        scratch_shapes=[pltpu.VMEM((1, 1), jnp.float32)],
        compiler_params=pltpu.CompilerParams(
            dimension_semantics=("parallel", "arbitrary"),
        ),
    )(*operands)

    return out[0, 0] + out[8, 0]


def power_series_ref(x1, x2, target, nlog_c1=None, nlog_c2=None, *,
                     value, power_min, power_max, tau=1.0):
    """Pure-JAX reference mirroring the PyTorch forward."""
    powers = jnp.arange(power_min, power_max, dtype=jnp.float32)
    w = float(value) ** powers
    z1 = x1.astype(jnp.float32) @ w
    z2 = x2.astype(jnp.float32) @ w
    if nlog_c1 is not None:
        z1 = z1 * jnp.exp(-nlog_c1)
    if nlog_c2 is not None:
        z2 = z2 * jnp.exp(-nlog_c2)
    r = float(value) ** target.astype(jnp.float32)

    def huber(d):
        a = jnp.abs(d)
        return jnp.where(a <= tau, a ** 2 / 2, tau ** 2 / 2 + tau * (a - tau))

    loss_12 = huber(z2 / z1 - r).mean()
    loss_21 = huber(z1 / z2 - 1.0 / r).mean()
    return (loss_12 + loss_21) / 2


if __name__ == "__main__":
    key = jax.random.PRNGKey(0)
    k1, k2, k3, k4, k5 = jax.random.split(key, 5)

    # Small shapes consistent with the module: batch=8, dim = power_max - power_min = 32.
    B = 8
    power_min, power_max = -16, 16
    value = 2.0 ** (1.0 / 12.0)   # one semitone frequency ratio
    tau = 1.0
    D = power_max - power_min

    x1 = jax.random.uniform(k1, (B, D), jnp.float32, minval=0.5, maxval=1.5)
    x2 = jax.random.uniform(k2, (B, D), jnp.float32, minval=0.5, maxval=1.5)
    target = jax.random.randint(k3, (B,), -3, 4).astype(jnp.float32)
    nlog_c1 = 0.1 * jax.random.normal(k4, (B,), jnp.float32)
    nlog_c2 = 0.1 * jax.random.normal(k5, (B,), jnp.float32)

    # With confidence terms.
    loss = power_series_loss(x1, x2, target, nlog_c1, nlog_c2,
                             value=value, power_min=power_min,
                             power_max=power_max, tau=tau)
    loss = jax.block_until_ready(loss)
    ref = power_series_ref(x1, x2, target, nlog_c1, nlog_c2,
                           value=value, power_min=power_min,
                           power_max=power_max, tau=tau)
    assert loss.shape == () and loss.dtype == jnp.float32
    assert jnp.allclose(loss, ref, atol=2e-5, rtol=1e-5), (loss, ref)

    # Without confidence terms (exercises the specialised no-cdelta kernel).
    loss_nc = jax.block_until_ready(
        power_series_loss(x1, x2, target, value=value, power_min=power_min,
                          power_max=power_max, tau=tau))
    ref_nc = power_series_ref(x1, x2, target, value=value, power_min=power_min,
                              power_max=power_max, tau=tau)
    assert jnp.allclose(loss_nc, ref_nc, atol=2e-5, rtol=1e-5), (loss_nc, ref_nc)

    print("KERNEL_OK")
</pallas_src>

<mosaic_0001>
module attributes {stable_mosaic.version = 11 : i64} {
  func.func @kernel(%arg0: i32, %arg1: i32, %arg2: memref<8x32xf32, #tpu.memory_space<vmem>>, %arg3: memref<8x32xf32, #tpu.memory_space<vmem>>, %arg4: memref<1x8xf32, #tpu.memory_space<vmem>>, %arg5: memref<1x8xf32, #tpu.memory_space<vmem>>, %arg6: memref<8x128xf32, #tpu.memory_space<vmem>>, %arg7: memref<1x1xf32, #tpu.memory_space<vmem>>) attributes {dimension_semantics = [#tpu.dimension_semantics<parallel>, #tpu.dimension_semantics<arbitrary>], iteration_bounds = array<i64: 2, 1>, scalar_prefetch = 0 : i64, scratch_operands = 1 : i64, tpu.core_type = #tpu.core_type<tc>, window_params = [{transform_indices = @transform_0, window_bounds = array<i64: 8, 32>}, {transform_indices = @transform_1, window_bounds = array<i64: 8, 32>}, {transform_indices = @transform_2, window_bounds = array<i64: 1, 8>}, {transform_indices = @transform_3, window_bounds = array<i64: 1, 8>}, {transform_indices = @transform_4, window_bounds = array<i64: 8, 128>}]} {
    %c0_i32 = arith.constant 0 : i32
    %0 = arith.cmpi eq, %arg1, %c0_i32 : i32
    %1 = arith.extui %0 : i1 to i32
    %c0_i32_0 = arith.constant 0 : i32
    %2 = arith.cmpi ne, %1, %c0_i32_0 : i32
    scf.if %2 {
      %cst_33 = arith.constant 0.000000e+00 : f32
      %75 = vector.broadcast %cst_33 : f32 to vector<1x1xf32>
      %c0_34 = arith.constant 0 : index
      %c0_35 = arith.constant 0 : index
      %76 = vector.load %arg7[%c0_34, %c0_35] : memref<1x1xf32, #tpu.memory_space<vmem>>, vector<1x1xf32>
      tpu.vector_store %arg7[%c0_34, %c0_35], %75 {strides = array<i32>} : memref<1x1xf32, #tpu.memory_space<vmem>>, vector<1x1xf32>,
    } else {
    }
    %3 = tpu.iota {dimensions = array<i32: 1>} : vector<8x32xi32>
    %4 = arith.sitofp %3 : vector<8x32xi32> to vector<8x32xf32>
    %cst = arith.constant -1.600000e+01 : f32
    %5 = vector.broadcast %cst : f32 to vector<8x32xf32>
    %6 = arith.addf %4, %5 : vector<8x32xf32>
    %cst_1 = arith.constant 0.0577622652 : f32
    %7 = vector.broadcast %cst_1 : f32 to vector<8x32xf32>
    %8 = arith.mulf %7, %6 : vector<8x32xf32>
    %9 = math.exp %8 : vector<8x32xf32>
    %c0 = arith.constant 0 : index
    %c0_2 = arith.constant 0 : index
    %10 = vector.load %arg2[%c0, %c0_2] : memref<8x32xf32, #tpu.memory_space<vmem>>, vector<8x32xf32>
    %c0_3 = arith.constant 0 : index
    %c0_4 = arith.constant 0 : index
    %11 = vector.load %arg3[%c0_3, %c0_4] : memref<8x32xf32, #tpu.memory_space<vmem>>, vector<8x32xf32>
    %cst_5 = arith.constant dense<0.000000e+00> : vector<8x8xf32>
    %12 = tpu.matmul %9, %10, %cst_5 {dimension_numbers = #tpu.dot_dimension_numbers<[1], [1], [0], [0], [0, 0, 1, 0], [], []>} : vector<8x32xf32>, vector<8x32xf32>, vector<8x8xf32> -> vector<8x8xf32>
    %13 = vector.extract_strided_slice %12 {offsets = [0, 0], sizes = [1, 8], strides = [1, 1]} : vector<8x8xf32> to vector<1x8xf32>
    %cst_6 = arith.constant dense<0.000000e+00> : vector<8x8xf32>
    %14 = tpu.matmul %9, %11, %cst_6 {dimension_numbers = #tpu.dot_dimension_numbers<[1], [1], [0], [0], [0, 0, 1, 0], [], []>} : vector<8x32xf32>, vector<8x32xf32>, vector<8x8xf32> -> vector<8x8xf32>
    %15 = vector.extract_strided_slice %14 {offsets = [0, 0], sizes = [1, 8], strides = [1, 1]} : vector<8x8xf32> to vector<1x8xf32>
    %c1_i32 = arith.constant 1 : i32
    %16 = arith.muli %arg0, %c1_i32 : i32
    %17 = arith.addi %16, %arg1 : i32
    %c8_i32 = arith.constant 8 : i32
    %18 = arith.muli %17, %c8_i32 : i32
    %19 = tpu.iota {dimensions = array<i32: 1>} : vector<1x8xi32>
    %20 = vector.broadcast %18 : i32 to vector<1x8xi32>
    %21 = arith.addi %20, %19 : vector<1x8xi32>
    %c8_i32_7 = arith.constant 8 : i32
    %22 = vector.broadcast %c8_i32_7 : i32 to vector<1x8xi32>
    %23 = arith.cmpi slt, %21, %22 : vector<1x8xi32>
    %cst_8 = arith.constant 1.000000e+00 : f32
    %24 = vector.broadcast %cst_8 : f32 to vector<1x8xf32>
    %25 = arith.select %23, %13, %24 : vector<1x8xi1>, vector<1x8xf32>
    %cst_9 = arith.constant 1.000000e+00 : f32
    %26 = vector.broadcast %cst_9 : f32 to vector<1x8xf32>
    %27 = arith.select %23, %15, %26 : vector<1x8xi1>, vector<1x8xf32>
    %28 = arith.divf %27, %25 : vector<1x8xf32>
    %c0_10 = arith.constant 0 : index
    %c0_11 = arith.constant 0 : index
    %29 = vector.load %arg5[%c0_10, %c0_11] : memref<1x8xf32, #tpu.memory_space<vmem>>, vector<1x8xf32>
    %30 = math.exp %29 : vector<1x8xf32>
    %31 = arith.mulf %28, %30 : vector<1x8xf32>
    %c0_12 = arith.constant 0 : index
    %c0_13 = arith.constant 0 : index
    %32 = vector.load %arg4[%c0_12, %c0_13] : memref<1x8xf32, #tpu.memory_space<vmem>>, vector<1x8xf32>
    %cst_14 = arith.constant 0.0577622652 : f32
    %33 = vector.broadcast %cst_14 : f32 to vector<1x8xf32>
    %34 = arith.mulf %32, %33 : vector<1x8xf32>
    %35 = math.exp %34 : vector<1x8xf32>
    %36 = arith.subf %31, %35 : vector<1x8xf32>
    %37 = math.absf %36 : vector<1x8xf32>
    %cst_15 = arith.constant 1.000000e+00 : f32
    %38 = vector.broadcast %cst_15 : f32 to vector<1x8xf32>
    %39 = arith.cmpf ole, %37, %38 : vector<1x8xf32>
    %cst_16 = arith.constant 5.000000e-01 : f32
    %40 = vector.broadcast %cst_16 : f32 to vector<1x8xf32>
    %41 = arith.mulf %40, %37 : vector<1x8xf32>
    %42 = arith.mulf %41, %37 : vector<1x8xf32>
    %cst_17 = arith.constant 1.000000e+00 : f32
    %43 = vector.broadcast %cst_17 : f32 to vector<1x8xf32>
    %44 = arith.mulf %43, %37 : vector<1x8xf32>
    %cst_18 = arith.constant 5.000000e-01 : f32
    %45 = vector.broadcast %cst_18 : f32 to vector<1x8xf32>
    %46 = arith.subf %44, %45 : vector<1x8xf32>
    %47 = arith.select %39, %42, %46 : vector<1x8xi1>, vector<1x8xf32>
    %cst_19 = arith.constant 1.000000e+00 : f32
    %48 = vector.broadcast %cst_19 : f32 to vector<1x8xf32>
    %49 = arith.divf %48, %31 : vector<1x8xf32>
    %cst_20 = arith.constant 1.000000e+00 : f32
    %50 = vector.broadcast %cst_20 : f32 to vector<1x8xf32>
    %51 = arith.divf %50, %35 : vector<1x8xf32>
    %52 = arith.subf %49, %51 : vector<1x8xf32>
    %53 = math.absf %52 : vector<1x8xf32>
    %cst_21 = arith.constant 1.000000e+00 : f32
    %54 = vector.broadcast %cst_21 : f32 to vector<1x8xf32>
    %55 = arith.cmpf ole, %53, %54 : vector<1x8xf32>
    %cst_22 = arith.constant 5.000000e-01 : f32
    %56 = vector.broadcast %cst_22 : f32 to vector<1x8xf32>
    %57 = arith.mulf %56, %53 : vector<1x8xf32>
    %58 = arith.mulf %57, %53 : vector<1x8xf32>
    %cst_23 = arith.constant 1.000000e+00 : f32
    %59 = vector.broadcast %cst_23 : f32 to vector<1x8xf32>
    %60 = arith.mulf %59, %53 : vector<1x8xf32>
    %cst_24 = arith.constant 5.000000e-01 : f32
    %61 = vector.broadcast %cst_24 : f32 to vector<1x8xf32>
    %62 = arith.subf %60, %61 : vector<1x8xf32>
    %63 = arith.select %55, %58, %62 : vector<1x8xi1>, vector<1x8xf32>
    %64 = arith.addf %47, %63 : vector<1x8xf32>
    %cst_25 = arith.constant 0.000000e+00 : f32
    %65 = vector.broadcast %cst_25 : f32 to vector<1x8xf32>
    %66 = arith.select %23, %64, %65 : vector<1x8xi1>, vector<1x8xf32>
    %c0_26 = arith.constant 0 : index
    %c0_27 = arith.constant 0 : index
    %67 = vector.load %arg7[%c0_26, %c0_27] : memref<1x1xf32, #tpu.memory_space<vmem>>, vector<1x1xf32>
    %cst_28 = arith.constant dense<0.000000e+00> : vector<1xf32>
    %68 = vector.multi_reduction <add>, %66, %cst_28 [1] : vector<1x8xf32> to vector<1xf32>
    %69 = vector.shape_cast %68 : vector<1xf32> to vector<1x1xf32>
    %70 = arith.addf %67, %69 : vector<1x1xf32>
    %c0_29 = arith.constant 0 : index
    %c0_30 = arith.constant 0 : index
    %71 = vector.load %arg7[%c0_29, %c0_30] : memref<1x1xf32, #tpu.memory_space<vmem>>, vector<1x1xf32>
    tpu.vector_store %arg7[%c0_29, %c0_30], %70 {strides = array<i32>} : memref<1x1xf32, #tpu.memory_space<vmem>>, vector<1x1xf32>,
    %c0_i32_31 = arith.constant 0 : i32
    %72 = arith.cmpi eq, %arg1, %c0_i32_31 : i32
    %73 = arith.extui %72 : i1 to i32
    %c0_i32_32 = arith.constant 0 : i32
    %74 = arith.cmpi ne, %73, %c0_i32_32 : i32
    scf.if %74 {
      %c0_33 = arith.constant 0 : index
      %c0_34 = arith.constant 0 : index
      %75 = vector.load %arg7[%c0_33, %c0_34] : memref<1x1xf32, #tpu.memory_space<vmem>>, vector<1x1xf32>
      %cst_35 = arith.constant 6.250000e-02 : f32
      %76 = vector.broadcast %cst_35 : f32 to vector<1x1xf32>
      %77 = arith.mulf %75, %76 : vector<1x1xf32>
      %78 = vector.shape_cast %77 : vector<1x1xf32> to vector<1x1xf32>
      %79 = vector.broadcast %78 : vector<1x1xf32> to vector<8x128xf32>
      %c0_36 = arith.constant 0 : index
      %c0_37 = arith.constant 0 : index
      %80 = vector.load %arg6[%c0_36, %c0_37] : memref<8x128xf32, #tpu.memory_space<vmem>>, vector<8x128xf32>
      tpu.vector_store %arg6[%c0_36, %c0_37], %79 {strides = array<i32>} : memref<8x128xf32, #tpu.memory_space<vmem>>, vector<8x128xf32>,
    } else {
    }
    return
  }
  func.func @transform_0(%arg0: i32, %arg1: i32) -> (i32, i32) {
    %c1_i32 = arith.constant 1 : i32
    %0 = arith.muli %arg0, %c1_i32 : i32
    %1 = arith.addi %0, %arg1 : i32
    %c0_i32 = arith.constant 0 : i32
    %2 = arith.minsi %1, %c0_i32 : i32
    %c0_i32_0 = arith.constant 0 : i32
    %c0_i32_1 = arith.constant 0 : i32
    return %2, %c0_i32_0 : i32, i32
  }
  func.func @transform_1(%arg0: i32, %arg1: i32) -> (i32, i32) {
    %c1_i32 = arith.constant 1 : i32
    %0 = arith.muli %arg0, %c1_i32 : i32
    %1 = arith.addi %0, %arg1 : i32
    %c0_i32 = arith.constant 0 : i32
    %2 = arith.minsi %1, %c0_i32 : i32
    %c0_i32_0 = arith.constant 0 : i32
    %c0_i32_1 = arith.constant 0 : i32
    return %2, %c0_i32_0 : i32, i32
  }
  func.func @transform_2(%arg0: i32, %arg1: i32) -> (i32, i32) {
    %c1_i32 = arith.constant 1 : i32
    %0 = arith.muli %arg0, %c1_i32 : i32
    %1 = arith.addi %0, %arg1 : i32
    %c0_i32 = arith.constant 0 : i32
    %2 = arith.minsi %1, %c0_i32 : i32
    %c0_i32_0 = arith.constant 0 : i32
    %c0_i32_1 = arith.constant 0 : i32
    return %c0_i32_0, %2 : i32, i32
  }
  func.func @transform_3(%arg0: i32, %arg1: i32) -> (i32, i32) {
    %c1_i32 = arith.constant 1 : i32
    %0 = arith.muli %arg0, %c1_i32 : i32
    %1 = arith.addi %0, %arg1 : i32
    %c0_i32 = arith.constant 0 : i32
    %2 = arith.minsi %1, %c0_i32 : i32
    %c0_i32_0 = arith.constant 0 : i32
    %c0_i32_1 = arith.constant 0 : i32
    return %c0_i32_0, %2 : i32, i32
  }
  func.func @transform_4(%arg0: i32, %arg1: i32) -> (i32, i32) {
    %c0_i32 = arith.constant 0 : i32
    %c0_i32_0 = arith.constant 0 : i32
    return %arg0, %c0_i32 : i32, i32
  }
}

</mosaic_0001>

<bundles_post_ra>
// kernel: tpu_custom_call.1
= control target key start
LH: loop header
LB: loop body
LE: loop exit
PB: predicated region body
PF: predicated region fallthrough
CT: control target
= control target key end

     0   :  { %9 = vsyncpa [#allocation4], 0  ;;  %s1281_s0 = inlined_call_operand.hbm [shape: f32[8,32], index: 0, kind: input, shape index: {}]   ;;  %s1282_s1 = inlined_call_operand.hbm [shape: f32[8,32], index: 1, kind: input, shape index: {}]   ;;  %s1283_s2 = inlined_call_operand.vmem [shape: f32[1,8], index: 2, kind: input, shape index: {}]   ;;  %s1284_s3 = inlined_call_operand.vmem [shape: f32[1,8], index: 3, kind: input, shape index: {}]   ;;  %s1285_s4 = inlined_call_operand.hbm [shape: f32[16,128], index: 4, kind: output, shape index: {}]  }
   0x1   :  { %11 = vsyncpa [#allocation4 + $0x1], 0 }
   0x2   :  { %12 = vsyncpa [#allocation7], 0 }
   0x3   :  { %14 = vsyncpa [#allocation7 + $0x1], 0 }
   0x4   :  { %15 = vsyncpa [#allocation5], 0 }
   0x5   :  { %17 = vsyncpa [#allocation5 + $0x1], 0  ;;  %s1064_s15 = smov 0   ;;  %s1066_s16 = smov 0  }
   0x6   :  { %s1068_s17 = smov 0   ;;  %s1070_s18 = smov 0  }
   0x7   :  { %s1072_s19 = smov 0   ;;  %s1074_s20 = smov 0  }
   0x8   :  { %s1076_s21 = smov 0   ;;  %s1078_s22 = smov 0  }
   0x9 LB: > { %s714_s23 = sadd.s32 4294967295, %s1031_s22   ;;  %s715_s24 = sadd.s32 4294967294, %s1031_s22   ;;  %s1031_s22 = sphi %s1078_s22, %s23_s22   ;;  %s1027_s21 = sphi %s1076_s21, %s1306_s21   ;;  %s1023_s20 = sphi %s1074_s20, %s1305_s20   ;;  %s1019_s19 = sphi %s1072_s19, %s1271_s19   ;;  %s1015_s18 = sphi %s1070_s18, %s1304_s18   ;;  %s1011_s17 = sphi %s1068_s17, %s1303_s17   ;;  %s1007_s16 = sphi %s1066_s16, %s1302_s16   ;;  %s1003_s15 = sphi %s1064_s15, %s1301_s15  }
   0xa   : > { %s35_s25 = sadd.s32 1, %s1027_s21  ;;  %p1000_p1 = scmp.ne.s32.totalorder %s1019_s19, 0 }
   0xb   : > { %p37_p0 = scmp.ge.s32.totalorder %s35_s25, 2  ;;  %p56_p2 = scmp.eq.s32.totalorder %s1031_s22, 0 }
   0xc   : > { %p61_p3 = scmp.ne.s32.totalorder %s1019_s19, %s1015_s18  ;;  %p62_p5 = scmp.eq.s32.totalorder %s714_s23, 0 }
   0xd   : > { %s1308_s25 = smov (%p37_p0, %s35_s25), 0  ;;  %p1110_p4 = por %p1000_p1, %p56_p2 }
   0xe   : > { %p1114_p6 = por %p62_p5, %p61_p3  ;;  %s167_s28 = ssub.s32 %s1027_s21, %s1308_s25 }
   0xf   : > { %p168_p7 = scmp.eq.s32.totalorder %s167_s28, 0  ;;  %s170_s29 = sadd.s32 1, %s1011_s17 }
  0x10   : > { %s1289_s27 = scalar_select %p1114_p6, 1, 0 }
  0x11   : > { %s1122_s30 = scalar_select %p168_p7, %s1011_s17, %s170_s29  }
  0x12   : > { %p180_p8 = scmp.ne.s32.totalorder %s1011_s17, %s1007_s16  ;;  %p181_p9 = scmp.eq.s32.totalorder %s714_s23, 1 }
  0x13   : > { %p186_p10 = scmp.ne.s32.totalorder %s1007_s16, %s1003_s15  ;;  %p187_p11 = scmp.eq.s32.totalorder %s715_s24, 1 }
  0x14   : > { %p1128_p12 = por %p181_p9, %p180_p8  ;;  %p774_p1 = scmp.lt.s32.totalorder %s1031_s22, 2 }
  0x15   : > { %p1133_p0 = por %p187_p11, %p186_p10  ;;  %s1033_s7 = smov [#allocation3]  }
  0x16   : > { %s1290_s5 = scalar_select %p1128_p12, 1, 0 }
  0x17   : > { %s1291_s6 = scalar_select %p1133_p0, 1, 0 }
  0x18   : > { %s221_s8 = sshll.u32 %s1033_s7, 4  ;;  %p1140_p2 = pnand %p774_p1, %p1110_p4  ;;  %s222_s8 = int_to_ptr.vmem [resolvable:$true] %s221_s8 }
  0x19   : > { %s864_s12 = scalar_lea.hbm %s1281_s0, 128 }
  0x1a   : > { %p865_p7 = scmp.ne.s32.totalorder %s1281_s0, %s864_s12  ;;  %p866_p8 = pneg %p1140_p2 }
  0x1b   : > { %p871_p10 = scmp.lt.u32.totalorder %s864_s12, %s864_s12  ;;  %p873_p11 = scmp.lt.u32.totalorder %s864_s12, %s1281_s0 }
  0x1c   : > { %p867_p4 = pnand %p866_p8, %p865_p7 }
  0x1d   : > { %p874_p1 = por %p873_p11, %p871_p10 }
  0x1e   : > { %p868_p9 = pneg %p867_p4 }
  0x20   : > { %p875_p13 = pnand %p874_p1, %p868_p9 }
  0x22   : > { %878 = shalt.err (!%p875_p13)
}
  0x23   : > { %s879_s24 = scalar_lea.vmem %s222_s8, 128  ;;  %s886_s26 = scalar_lea.vmem %s222_s8, 256 }
  0x24   : > { %p880_p3 = scmp.ne.s32.totalorder %s222_s8, %s879_s24  ;;  %p887_p12 = scmp.lt.s32.totalorder %s222_s8, %s222_s8 }
  0x25   : > { %p888_p6 = scmp.lt.s32.totalorder %s886_s26, %s879_s24 }
  0x26   : > { %p882_p5 = pnand %p880_p3, %p866_p8 }
  0x27   : > { %p889_p7 = por %p888_p6, %p887_p12 }
  0x28   : > { %p883_p0 = pneg %p882_p5 }
  0x2a   : > { %p890_p4 = pnand %p889_p7, %p883_p0 }
  0x2c   : > { %893 = shalt.err (!%p890_p4)
}
  0x2d   : > { %766 = dma.hbm_to_vmem [thread:$0]  (!%p1140_p2), %s1281_s0, 128, %s222_s8, [#allocation4]  }
  0x2e   : > { %p1293_p13 = scmp.lt.s32.totalorder %s1031_s22, 3  ;;  %p1294_p9 = scmp.ge.s32.totalorder %s1031_s22, 1 }
  0x2f   : > { %s1034_s10 = smov [#allocation6]   ;;  %s894_s14 = scalar_lea.hbm %s1282_s1, 128 }
  0x30   : > { %p1172_p10 = pnand %p1294_p9, %p1293_p13  ;;  %s242_s11 = sshll.u32 %s1034_s10, 4  ;;  %s243_s11 = int_to_ptr.vmem [resolvable:$true] %s242_s11 }
  0x31   : > { %p895_p6 = scmp.ne.s32.totalorder %s1282_s1, %s894_s14  ;;  %p901_p3 = scmp.lt.u32.totalorder %s894_s14, %s894_s14 }
  0x32   : > { %s1295_s7 = scalar_select %p1172_p10, 1, 0 }
  0x33   : > { %p897_p12 = pnand %p895_p6, %p866_p8  ;;  %p903_p5 = scmp.lt.u32.totalorder %s894_s14, %s1282_s1 }
  0x35   : > { %p898_p0 = pneg %p897_p12  ;;  %p904_p11 = por %p903_p5, %p901_p3 }
  0x37   : > { %p905_p1 = pnand %p904_p11, %p898_p0 }
  0x39   : > { %908 = shalt.err (!%p905_p1)
}
  0x3a   : > { %s909_s26 = scalar_lea.vmem %s243_s11, 128  ;;  %s916_s28 = scalar_lea.vmem %s243_s11, 256 }
  0x3b   : > { %p910_p7 = scmp.ne.s32.totalorder %s243_s11, %s909_s26  ;;  %p917_p9 = scmp.lt.s32.totalorder %s243_s11, %s243_s11 }
  0x3c   : > { %p918_p10 = scmp.lt.s32.totalorder %s916_s28, %s909_s26 }
  0x3d   : > { %p912_p4 = pnand %p910_p7, %p866_p8 }
  0x3e   : > { %p919_p6 = por %p918_p10, %p917_p9 }
  0x3f   : > { %p913_p13 = pneg %p912_p4 }
  0x41   : > { %p920_p12 = pnand %p919_p6, %p913_p13 }
  0x43   : > { %923 = shalt.err (!%p920_p12)
}
  0x44   : > { %769 = dma.hbm_to_vmem [thread:$0]  (!%p1140_p2), %s1282_s1, 128, %s243_s11, [#allocation7]  }
  0x45   : > { %p1296_p0 = scmp.ne.s32.totalorder %s1295_s7, 0 }
  0x46   : > { %s277_s12 = sand.u32 (!%p1296_p0), 1, %s1019_s19   ;;  %p1297_p8 = scmp.ne.s32.totalorder (!%p1296_p0), %s1289_s27, 0 }
  0x47   : > { %275 = sbr.rel (%p1296_p0) target bundleno = 654 (0x28e), region = 36  ;;  %s723_s13 = sshll.u32 (!%p1296_p0), %s277_s12, 3 }
  0x48   : > { %s278_s14 = scalar_lea.sflag (!%p1296_p0), [#allocation4], %s277_s12  ;;  %s281_s18 = scalar_lea.vmem (!%p1296_p0), [#allocation3], %s723_s13 }
  0x4e   : > { %989 = dma.done.wait (%p1297_p8), %s278_s14, 128  }
  0x4f   : > { %991 = vsyncadd (%p1297_p8), %s278_s14, 4294967168  ;;  %s287_s9 = scalar_lea.sflag [#allocation7], %s277_s12  ;;  %s290_s23 = scalar_lea.vmem [#allocation6], %s723_s13 }
  0x50   : > { %993 = dma.done.wait (%p1297_p8), %s287_s9, 128  }
  0x51   : > { %995 = vsyncadd (%p1297_p8), %s287_s9, 4294967168  ;;  %vm360_vm0 = vcmask 0   ;;  %v1035_v0 = vmov 0.0   ;;  %vm1036_vm1 = vmmov 0   ;;  %v362_v1 = vlaneseq  ;;  %v369_v4 = vld [vmem:[%s281_s18] sm:$0xff]  ;;  %v370_v6 = vld [vmem:[%s290_s23] sm:$0xff] }
  0x52   : > { %361 = vst.msk [vmem:[#allocation2] sm:$0x1] %vm360_vm0, %v1035_v0  ;;  %747 = vmatprep.subr.mxu0 %v1035_v0  ;;  %749 = vmatprep.mubr.msk.f32.mxu0 %vm1036_vm1, %v1035_v0  ;;  %vm371_vm2 = vcmask 261120   ;;  %p339_p2 = scmp.lt.s32.totalorder %s1023_s20, 0  ;;  %s736_s24 = sshll.u32 %s1023_s20, 3  ;;  %vm559_vm6 = vcmask 57344  }
  0x53   : > { %752 = vmatprep.subr.mxu1 %v1035_v0  ;;  %754 = vmatprep.mubr.msk.f32.mxu1 %vm1036_vm1, %v1035_v0  ;;  %v363_v2 = vand.u32 127, %v362_v1  ;;  %v523_v11 = vstv %s736_s24  ;;  %v1037_v45 = vmov 0   ;;  %v573_v49 = vshrl.u32 %v362_v1, 7  ;;  %s329_s10 = sand.u32 1, %s1007_s16   ;;  %s740_s18 = sshll.u32 %s1023_s20, 7 }
  0x54   : > { %748 = vmatpush3.xpose.msk.msra.mxu0 %vm371_vm2, %v369_v4  ;;  %753 = vmatpush3.xpose.msk.msra.mxu1 %vm371_vm2, %v370_v6  ;;  %s340_s27 = scalar_select %p339_p2, %s1023_s20, 0 }
  0x55   : > { %v364_v3 = vcvt.s32.f32 %v363_v2  ;;  %v524_v14 = vadd.s32 %v523_v11, %v363_v2  ;;  %851 = vset.pattern.permute.xlu0 %v1037_v45  ;;  %v574_v50 = vsub.s32 0, %v573_v49  ;;  %s725_s12 = sshll.u32 %s329_s10, 3  ;;  %s582_s7 = scalar_lea.sflag [#allocation5], %s329_s10 }
  0x56   : > { %s1310_s27 = smov (!%p339_p2, %s340_s27), 0  ;;  %s331_s13 = scalar_lea.vmem [#allocation8], %s725_s12 }
  0x57   : > { %v365_v5 = vadd.f32 -16.0, %v364_v3  ;;  %s343_s8 = scalar_lea.vmem %s1283_s2, %s1310_s27  ;;  %s352_s29 = scalar_lea.vmem %s1284_s3, %s1310_s27  ;;  %vm525_vm3 = vcmp.lt.s32.totalorder %v524_v14, 8 }
  0x58   : > { %v534_v10 = vld [vmem:[%s343_s8] sm:$0x1]  ;;  %s595_s14 = sshll.u32 %s331_s13, 4  ;;  %s1230_s27 = scalar_lea.hbm %s1285_s4, %s740_s18  ;;  %s1225_s14 = int_to_ptr.vmem [resolvable:$true] %s595_s14 }
  0x59   : > { %v366_v7 = vmul.f32 0.057762265, %v365_v5  ;;  %v530_v12 = vld [vmem:[%s352_s29] sm:$0x1]  ;;  %v535_v13 = vmul.f32 0.057762265, %v534_v10 }
  0x5a   : > { %v531_v15 = vmul.f32 1.442695, %v530_v12  ;;  %v558_v46 = vld [vmem:[#allocation2] sm:$0x1]  ;;  %s924_s11 = scalar_lea.vmem %s1225_s14, 128  ;;  %p1298_p3 = scmp.ne.s32.totalorder %s1290_s5, 0 }
  0x5b   : > { %v367_v8 = vmul.f32 1.442695, %v366_v7  ;;  %v536_v16 = vmul.f32 1.442695, %v535_v13  ;;  %p925_p10 = scmp.ne.s32.totalorder %s1225_s14, %s924_s11  ;;  %s1038_s8 = smov [#allocation8]  }
  0x5c   : > { %s928_s20 = sshll.u32 %s1038_s8, 4  ;;  %s929_s20 = int_to_ptr.vmem [resolvable:$false] %s928_s20 }
  0x5d   : > { %852 = vpow2.f32 %v367_v8  ;;  %p926_p5 = pnand %p925_p10, %p1298_p3  ;;  %s930_s24 = scalar_lea.vmem %s929_s20, 256 }
  0x5e   : > { %854 = vpow2.f32 %v531_v15  ;;  %p931_p1 = scmp.lt.s32.totalorder %s1225_s14, %s929_s20  ;;  %p932_p7 = scmp.lt.s32.totalorder %s930_s24, %s924_s11 }
  0x5f   : > { %856 = vpow2.f32 %v536_v16  ;;  %p927_p11 = pneg %p926_p5 }
  0x60   : > { %p933_p4 = por %p932_p7, %p931_p1 }
  0x62   : > { %p934_p13 = pnand %p933_p4, %p927_p11 }
  0x67   : > { %v853_v9 = vpop.eup %852 }
  0x68   : > { %750 = vmatmul.mubr.msk.f32.vlgmr.msra.gmra.mrb[0].mxu0 %vm371_vm2, %v853_v9  ;;  %755 = vmatmul.mubr.msk.f32.vlgmr.msra.gmra.mrb[0].mxu1 %vm371_vm2, %v853_v9  ;;  %v855_v22 = vpop.eup %854 }
  0x69   : > { %v857_v24 = vpop.eup %856 }
 0x13b   : > { %v444_v17 = vpop.f32.mrb[0].mxu0  ;;  %v517_v18 = vpop.f32.mrb[0].mxu1 }
 0x13c   : > { %v526_v19 = vsel %vm525_vm3, %v444_v17, 1.0  ;;  %v751_v20 = vpop.f32.mrb[1].mxu0  ;;  %v756_v21 = vpop.f32.mrb[1].mxu1  ;;  %v527_v23 = vsel %vm525_vm3, %v517_v18, 1.0 }
 0x13d   : > { %858 = vrcp.f32 %v526_v19 }
 0x13e   : > { %860 = vrcp.f32 %v857_v24 }
 0x147   : > { %v859_v25 = vpop.eup %858 }
 0x148   : > { %v529_v26 = vmul.f32 %v859_v25, %v527_v23  ;;  %v861_v30 = vpop.eup %860 }
 0x14a   : > { %v533_v27 = vmul.f32 %v855_v22, %v529_v26 }
 0x14c   : > { %862 = vrcp.f32 %v533_v27  ;;  %v538_v28 = vsub.f32 %v533_v27, %v857_v24 }
 0x14e   : > { %v539_v29 = vand.u32 2147483647, %v538_v28 }
 0x150   : > { %v541_v32 = vmul.f32 0.5, %v539_v29  ;;  %v737_v37 = vadd.f32 -0.5, %v539_v29  ;;  %vm540_vm4 = vcmp.le.f32.partialorder %v539_v29, 1.0 }
 0x152   : > { %v542_v35 = vmul.f32 %v541_v32, %v539_v29 }
 0x154   : > { %v544_v40 = vsel %vm540_vm4, %v542_v35, %v737_v37 }
 0x156   : > { %v863_v31 = vpop.eup %862 }
 0x157   : > { %v549_v33 = vsub.f32 %v863_v31, %v861_v30 }
 0x159   : > { %v550_v34 = vand.u32 2147483647, %v549_v33 }
 0x15b   : > { %v552_v36 = vmul.f32 0.5, %v550_v34  ;;  %v738_v39 = vadd.f32 -0.5, %v550_v34  ;;  %vm551_vm5 = vcmp.le.f32.partialorder %v550_v34, 1.0 }
 0x15d   : > { %v553_v38 = vmul.f32 %v552_v36, %v550_v34 }
 0x15f   : > { %v555_v41 = vsel %vm551_vm5, %v553_v38, %v738_v39 }
 0x160   : > { %v556_v42 = vadd.f32 %v555_v41, %v544_v40 }
 0x162   : > { %v557_v43 = vsel %vm525_vm3, %v556_v42, 0.0 }
 0x163   : > { %v560_v44 = vsel %vm559_vm6, %v557_v43, 0.0 }
 0x164   : > { %561 = vadd.xlane.f32.xlu0 %v560_v44 }
 0x1f1   : > { %v562_v47 = vpop.xlane.xlu0 %561 }
 0x1f2   : > { %v563_v48 = vadd.f32 %v562_v47, %v558_v46 }
 0x1f4   : > { %565 = vst.msk [vmem:[#allocation2] sm:$0x1] %vm360_vm0, %v563_v48 }
 0x1fb   : > { %v569_v51 = vld [vmem:[#allocation2] sm:$0x1] }
 0x1fc   : > { %v570_v52 = vmul.f32 0.0625, %v569_v51 }
 0x1fe   : > { %v575_v53 = vrot.slane %v570_v52, %v574_v50 }
 0x200   : > { %577 = vperm.xlu0 %851, %v575_v53  }
 0x27f   : > { %v578_v54 = vpop.permute.xlu0 %577 }
 0x280   : > { %580 = vst [vmem:[%s331_s13] sm:$0xff] %v578_v54 }
 0x281   : > { %937 = shalt.err (!%p934_p13)
}
 0x282   : > { %s938_s26 = scalar_lea.hbm %s1230_s27, 128  ;;  %s942_s10 = scalar_lea.hbm %s1285_s4, 256 }
 0x283   : > { %p939_p9 = scmp.ne.s32.totalorder %s1230_s27, %s938_s26  ;;  %p943_p0 = scmp.lt.u32.totalorder %s1230_s27, %s1285_s4 }
 0x284   : > { %p944_p8 = scmp.lt.u32.totalorder %s942_s10, %s938_s26  ;;  %p946_p10 = scmp.lt.u32.totalorder %s938_s26, %s1230_s27 }
 0x285   : > { %p940_p6 = pnand %p939_p9, %p1298_p3 }
 0x286   : > { %p945_p2 = por %p944_p8, %p943_p0 }
 0x287   : > { %p941_p12 = pneg %p940_p6 }
 0x288   : > { %p947_p5 = por %p946_p10, %p945_p2 }
 0x28a   : > { %p948_p11 = pnand %p947_p5, %p941_p12 }
 0x28c   : > { %951 = shalt.err (!%p948_p11)
}
 0x28d   : > { %761 = dma.vmem_to_hbm [thread:$0]  (%p1298_p3), %s1225_s14, 128, %s1230_s27, %s582_s7  }
 0x28e PF: > { %s607_s18 = sand.u32 1, %s1003_s15   ;;  %p1299_p1 = scmp.ne.s32.totalorder %s1291_s6, 0 }
 0x28f   : > { %p1300_p7 = scmp.ge.s32.totalorder %s1031_s22, 2  ;;  %s608_s9 = scalar_lea.sflag [#allocation5], %s607_s18 }
 0x291   : > { %p771_p4 = pnand %p1300_p7, %p1299_p1 }
 0x293   : > { %997 = dma.done.wait (!%p771_p4), %s608_s9, 128  }
 0x294   : > { %999 = vsyncadd (!%p771_p4), %s608_s9, 4294967168  ;;  %s23_s22 = sadd.s32 1, %s1031_s22   ;;  %s1301_s15 = smov %s1007_s16 }
 0x295   : > { %p20_p13 = scmp.ge.s32.totalorder %s23_s22, 4   ;;  %s1302_s16 = smov %s1011_s17 }
 0x296   : > { %s1303_s17 = smov %s1122_s30  ;;  %s1304_s18 = smov %s1019_s19 }
 0x297   : > { %s1271_s19 = smov 0   ;;  %s1305_s20 = smov %s1027_s21 }
 0x298   : > { %s1306_s21 = smov %s1308_s25  ;;  %22 = sbr.rel (!%p20_p13) target bundleno = 9 (0x9), region = 108 }
 0x29f   :  { %613 = vsyncpa [#allocation4], 1 }
 0x2a0   :  { %615 = vsyncpa [#allocation4 + $0x1], 1 }
 0x2a1   :  { %616 = vsyncpa [#allocation7], 1 }
 0x2a2   :  { %618 = vsyncpa [#allocation7 + $0x1], 1 }
 0x2a3   :  { %619 = vsyncpa [#allocation5], 1 }
 0x2a4   :  { %621 = vsyncpa [#allocation5 + $0x1], 1 }

</bundles_post_ra>
